<compile_context>
chip_gen: v7x
topology: tpu7x:2x2x1
jax: 0.10.0
libtpu: 0.0.40
codegen_flags: <defaults>
</compile_context>

<pallas_src>
import math

import jax
import jax.numpy as jnp
from jax.experimental import pallas as pl
from jax.experimental.pallas import tpu as pltpu

# ----------------------------- configuration --------------------------------
BATCH = 2
SEQ = 8
HIDDEN = 32
NUM_HEADS = 2
HEAD_DIM = HIDDEN // NUM_HEADS
NUM_LAYERS = 2          # length of module_list
LN_EPS = 1e-5
NEG_INF = -1e30

# MXU operand dtype: bf16 inputs + f32 accumulation (native on v6e/v7x; on
# v5e only the MXU sees bf16 while all VPU/EUP math below stays in f32).
MATMUL_DTYPE = jnp.bfloat16


def _gelu_tanh(x):
    # GPT2 "gelu_new"
    return 0.5 * x * (1.0 + jnp.tanh(
        math.sqrt(2.0 / math.pi) * (x + 0.044715 * x * x * x)))


def _dot(a, b, trans_b=False):
    """MXU matmul: bf16 operands, f32 accumulation."""
    dn = (((1,), (1 if trans_b else 0,)), ((), ()))
    return jax.lax.dot_general(a.astype(MATMUL_DTYPE), b.astype(MATMUL_DTYPE),
                               dn, preferred_element_type=jnp.float32)


def _layernorm(x, g, b):
    mu = jnp.mean(x, axis=-1, keepdims=True)
    var = jnp.mean(jnp.square(x - mu), axis=-1, keepdims=True)
    return (x - mu) * jax.lax.rsqrt(var + LN_EPS) * g + b


# ------------------------------- kernel -------------------------------------
# Rows of the packed (9, H) f32 bias/gain slab.
_G1, _B1, _BQ, _BK, _BV, _BO, _G2, _B2, _BM2 = range(9)

# Row offsets (in units of H) inside the packed (4H, 4H) bf16 weight slab.
_ROW_QKV, _ROW_W1, _ROW_W2T, _ROW_WO = 0, 1, 2, 3


def fused_blocks_kernel(x_ref, mask_ref, w_ref, bh_ref, bm_ref, o_ref):
    """One grid step == one transformer block applied to the whole batch.

    x_ref, o_ref : (B*S, H)   hidden; o_ref stays resident in VMEM across layers
    mask_ref     : (B*S, B*S) additive block-diagonal causal mask (0 / -1e30)
    w_ref        : (4H, 4H)   bf16 slab: rows [qkv|pad], [w1], [w2^T], [wo|pad]
    bh_ref       : (9, H)     f32 packed [g1, b1, bq, bk, bv, bo, g2, b2, bm2]
    bm_ref       : (1, 4H)    f32 packed [bm1]
    """
    H = HIDDEN

    # Load the hidden state into the (VMEM-resident) output block once.
    @pl.when(pl.program_id(0) == 0)
    def _():
        o_ref[...] = x_ref[...]

    h = o_ref[...]                                        # (N, H) float32

    # ---- LayerNorm 1 + fused QKV projection (full 128-lane weight rows) ----
    ln1 = _layernorm(h, bh_ref[_G1], bh_ref[_B1])
    qkv = _dot(ln1, w_ref[_ROW_QKV * H:(_ROW_QKV + 1) * H, :])   # (N, 4H) f32
    q = qkv[:, 0 * H:1 * H] + bh_ref[_BQ]
    k = qkv[:, 1 * H:2 * H] + bh_ref[_BK]
    v = qkv[:, 2 * H:3 * H] + bh_ref[_BV]
    # (cols 3H:4H of qkv are zero-padding and never read)

    # ---- causal self-attention, whole batch per matmul ----
    # Per head: one (N, N) score matmul covering every batch element at once;
    # the precomputed additive mask removes cross-batch and future positions.
    # The head concat is folded into the output projection by accumulating
    # ctx_h @ wo[h*hd:(h+1)*hd, :].
    scale = 1.0 / math.sqrt(HEAD_DIM)
    mask = mask_ref[...]
    wo = w_ref[_ROW_WO * H:(_ROW_WO + 1) * H, :][:, 0:H]         # (H, H) bf16
    attn = None
    for hi in range(NUM_HEADS):
        sl = slice(hi * HEAD_DIM, (hi + 1) * HEAD_DIM)
        sc = _dot(q[:, sl], k[:, sl], trans_b=True) * scale + mask     # (N, N)
        sc = sc - jnp.max(sc, axis=-1, keepdims=True)                  # f32
        p = jnp.exp(sc)
        p = p * pl.reciprocal(jnp.sum(p, axis=-1, keepdims=True), approx=True)
        ctx = _dot(p, v[:, sl])                                        # (N, hd)
        contrib = _dot(ctx, wo[sl, :])                                 # (N, H)
        attn = contrib if attn is None else attn + contrib
    h = h + attn + bh_ref[_BO]                                         # residual

    # ---- LayerNorm 2 + MLP ----
    ln2 = _layernorm(h, bh_ref[_G2], bh_ref[_B2])
    m = _dot(ln2, w_ref[_ROW_W1 * H:(_ROW_W1 + 1) * H, :]) + bm_ref[0]  # (N, 4H)
    m = _gelu_tanh(m)
    m = _dot(m, w_ref[_ROW_W2T * H:(_ROW_W2T + 1) * H, :],
             trans_b=True) + bh_ref[_BM2]                               # (N, H)

    o_ref[...] = h + m


# ----------------------------- wrapper ---------------------------------------
def _blockdiag_causal_mask(B, S):
    """(B*S, B*S) additive mask: 0 where attention allowed, -1e30 elsewhere."""
    causal = jnp.tril(jnp.ones((S, S), jnp.float32))
    block = jnp.kron(jnp.eye(B, dtype=jnp.float32), causal)
    return jnp.where(block > 0.0, 0.0, NEG_INF).astype(jnp.float32)


@jax.jit
def hf_model_list_forward(hidden, stacked_params):
    """forward(): for module in module_list: hidden = module(hidden)[0].
    All modules fused into a single pallas_call with a grid over layers."""
    B, S, H = hidden.shape
    N = B * S
    w_slab, bias_h, bias_m = stacked_params
    L = w_slab.shape[0]

    x2 = hidden.reshape(N, H)
    mask = _blockdiag_causal_mask(B, S)

    grid_spec = pltpu.PrefetchScalarGridSpec(
        num_scalar_prefetch=0,
        grid=(L,),                                           # layers (sequential)
        in_specs=[
            pl.BlockSpec((N, H), lambda l: (0, 0)),          # hidden (fetched once)
            pl.BlockSpec((N, N), lambda l: (0, 0)),          # mask   (fetched once)
            pl.BlockSpec((None, 4 * H, 4 * H), lambda l: (l, 0, 0)),   # bf16 weights
            pl.BlockSpec((None, 9, H), lambda l: (l, 0, 0)),           # f32 bias slab
            pl.BlockSpec((None, 1, 4 * H), lambda l: (l, 0, 0)),       # f32 mlp bias
        ],
        out_specs=pl.BlockSpec((N, H), lambda l: (0, 0)),    # VMEM-resident acc
    )

    out = pl.pallas_call(
        fused_blocks_kernel,
        out_shape=jax.ShapeDtypeStruct((N, H), jnp.float32),
        grid_spec=grid_spec,
        compiler_params=pltpu.CompilerParams(
            dimension_semantics=("arbitrary",)),
    )(x2, mask, w_slab, bias_h, bias_m)
    return out.reshape(B, S, H)


# ----------------------- deterministic parameter init ------------------------
def init_layer_params(key, H):
    ks = jax.random.split(key, 12)
    std = 0.02
    return dict(
        g1=1.0 + 0.1 * jax.random.normal(ks[0], (H,), jnp.float32),
        b1=0.05 * jax.random.normal(ks[1], (H,), jnp.float32),
        wqkv=std * jax.random.normal(ks[2], (H, 3 * H), jnp.float32),
        bqkv=0.02 * jax.random.normal(ks[3], (3 * H,), jnp.float32),
        wo=std * jax.random.normal(ks[4], (H, H), jnp.float32),
        bo=0.02 * jax.random.normal(ks[5], (H,), jnp.float32),
        g2=1.0 + 0.1 * jax.random.normal(ks[6], (H,), jnp.float32),
        b2=0.05 * jax.random.normal(ks[7], (H,), jnp.float32),
        w1=std * jax.random.normal(ks[8], (H, 4 * H), jnp.float32),
        bm1=0.02 * jax.random.normal(ks[9], (4 * H,), jnp.float32),
        w2=std * jax.random.normal(ks[10], (4 * H, H), jnp.float32),
        bm2=0.02 * jax.random.normal(ks[11], (H,), jnp.float32),
    )


def _pack_weight_slab(p, H):
    """Pack one layer's 4 weight matrices into a (4H, 4H) bf16, lane-dense slab.
    Row blocks (H rows each): [wqkv | 0], [w1], [w2^T], [wo | 0]."""
    z = lambda r, c: jnp.zeros((r, c), jnp.float32)
    row_qkv = jnp.concatenate([p['wqkv'], z(H, H)], axis=1)       # (H, 4H)
    row_w1 = p['w1']                                              # (H, 4H)
    row_w2t = p['w2'].T                                           # (H, 4H)
    row_wo = jnp.concatenate([p['wo'], z(H, 3 * H)], axis=1)      # (H, 4H)
    slab = jnp.concatenate([row_qkv, row_w1, row_w2t, row_wo], axis=0)
    return slab.astype(jnp.bfloat16)                              # (4H, 4H) bf16


def stack_layer_params(layer_params):
    """Stack per-layer params with a leading layer axis: one bf16 weight slab
    and two f32 gain/bias slabs per layer (3 streamed DMAs / layer total)."""
    H = layer_params[0]['g1'].shape[0]
    w_slab = jnp.stack([_pack_weight_slab(p, H) for p in layer_params])  # (L,4H,4H)
    bias_h = jnp.stack([
        jnp.stack([p['g1'], p['b1'],
                   p['bqkv'][0:H], p['bqkv'][H:2 * H], p['bqkv'][2 * H:3 * H],
                   p['bo'], p['g2'], p['b2'], p['bm2']])
        for p in layer_params])                                    # (L, 9, H)
    bias_m = jnp.stack([p['bm1'][None, :] for p in layer_params])  # (L, 1, 4H)
    return (w_slab, bias_h, bias_m)


# --------------------------- pure-JAX reference -------------------------------
def ref_block(h, p):
    B, S, H = h.shape
    x = _layernorm(h, p['g1'], p['b1'])
    qkv = x @ p['wqkv'] + p['bqkv']
    q, k, v = jnp.split(qkv, 3, axis=-1)
    q = q.reshape(B, S, NUM_HEADS, HEAD_DIM).transpose(0, 2, 1, 3)
    k = k.reshape(B, S, NUM_HEADS, HEAD_DIM).transpose(0, 2, 1, 3)
    v = v.reshape(B, S, NUM_HEADS, HEAD_DIM).transpose(0, 2, 1, 3)
    sc = jnp.einsum('bhqd,bhkd->bhqk', q, k) / math.sqrt(HEAD_DIM)
    causal = jnp.tril(jnp.ones((S, S), bool))
    sc = jnp.where(causal, sc, NEG_INF)
    pr = jax.nn.softmax(sc, axis=-1)
    a = jnp.einsum('bhqk,bhkd->bhqd', pr, v).transpose(0, 2, 1, 3).reshape(B, S, H)
    h = h + a @ p['wo'] + p['bo']
    x = _layernorm(h, p['g2'], p['b2'])
    m = _gelu_tanh(x @ p['w1'] + p['bm1']) @ p['w2'] + p['bm2']
    return h + m


# --------------------------------- main ---------------------------------------
if __name__ == "__main__":
    key = jax.random.PRNGKey(0)
    k_in, *k_layers = jax.random.split(key, 1 + NUM_LAYERS)

    hidden = jax.random.normal(k_in, (BATCH, SEQ, HIDDEN), jnp.float32)
    layer_params = [init_layer_params(k, HIDDEN) for k in k_layers]
    stacked = stack_layer_params(layer_params)

    out = hf_model_list_forward(hidden, stacked)
    out = jax.block_until_ready(out)

    # correctness check against plain-JAX f32 reference
    ref = hidden
    for p in layer_params:
        ref = ref_block(ref, p)
    assert out.shape == (BATCH, SEQ, HIDDEN)
    err = float(jnp.max(jnp.abs(out - ref)))
    # tolerance sized for bf16 MXU operands with f32 accumulation
    assert err < 2e-3, f"mismatch vs reference: {err}"

    print("KERNEL_OK")
</pallas_src>

<mosaic_0001>
module attributes {stable_mosaic.version = 11 : i64} {
  func.func @fused_blocks_kernel(%arg0: i32, %arg1: memref<16x32xf32, #tpu.memory_space<vmem>>, %arg2: memref<16x16xf32, #tpu.memory_space<vmem>>, %arg3: memref<1x128x128xbf16, #tpu.memory_space<vmem>>, %arg4: memref<1x9x32xf32, #tpu.memory_space<vmem>>, %arg5: memref<1x1x128xf32, #tpu.memory_space<vmem>>, %arg6: memref<16x32xf32, #tpu.memory_space<vmem>>) attributes {dimension_semantics = [#tpu.dimension_semantics<arbitrary>], iteration_bounds = array<i64: 2>, scalar_prefetch = 0 : i64, scratch_operands = 0 : i64, tpu.core_type = #tpu.core_type<tc>, window_params = [{pipeline_mode = #tpu.pipeline_mode<synchronous>, transform_indices = @transform_0, window_bounds = array<i64: 16, 32>}, {pipeline_mode = #tpu.pipeline_mode<synchronous>, transform_indices = @transform_1, window_bounds = array<i64: 16, 16>}, {transform_indices = @transform_2, window_bounds = array<i64: 1, 128, 128>}, {transform_indices = @transform_3, window_bounds = array<i64: 1, 9, 32>}, {transform_indices = @transform_4, window_bounds = array<i64: 1, 1, 128>}, {pipeline_mode = #tpu.pipeline_mode<synchronous>, transform_indices = @transform_5, window_bounds = array<i64: 16, 32>}]} {
    %c0_i32 = arith.constant 0 : i32
    %0 = arith.cmpi eq, %arg0, %c0_i32 : i32
    %1 = arith.extui %0 : i1 to i32
    %c0_i32_0 = arith.constant 0 : i32
    %2 = arith.cmpi ne, %1, %c0_i32_0 : i32
    scf.if %2 {
      %c0_65 = arith.constant 0 : index
      %c0_66 = arith.constant 0 : index
      %176 = vector.load %arg1[%c0_65, %c0_66] : memref<16x32xf32, #tpu.memory_space<vmem>>, vector<16x32xf32>
      %c0_67 = arith.constant 0 : index
      %c0_68 = arith.constant 0 : index
      %177 = vector.load %arg6[%c0_67, %c0_68] : memref<16x32xf32, #tpu.memory_space<vmem>>, vector<16x32xf32>
      tpu.vector_store %arg6[%c0_67, %c0_68], %176 {strides = array<i32>} : memref<16x32xf32, #tpu.memory_space<vmem>>, vector<16x32xf32>,
    } else {
    }
    %c0 = arith.constant 0 : index
    %c0_1 = arith.constant 0 : index
    %3 = vector.load %arg6[%c0, %c0_1] : memref<16x32xf32, #tpu.memory_space<vmem>>, vector<16x32xf32>
    %c0_2 = arith.constant 0 : index
    %c0_3 = arith.constant 0 : index
    %c0_4 = arith.constant 0 : index
    %4 = vector.load %arg4[%c0_2, %c0_3, %c0_4] : memref<1x9x32xf32, #tpu.memory_space<vmem>>, vector<1x1x32xf32>
    %5 = vector.shape_cast %4 : vector<1x1x32xf32> to vector<32xf32>
    %c0_5 = arith.constant 0 : index
    %c1 = arith.constant 1 : index
    %c0_6 = arith.constant 0 : index
    %6 = vector.load %arg4[%c0_5, %c1, %c0_6] : memref<1x9x32xf32, #tpu.memory_space<vmem>>, vector<1x1x32xf32>
    %7 = vector.shape_cast %6 : vector<1x1x32xf32> to vector<32xf32>
    %cst = arith.constant dense<0.000000e+00> : vector<16xf32>
    %8 = vector.multi_reduction <add>, %3, %cst [1] : vector<16x32xf32> to vector<16xf32>
    %9 = vector.shape_cast %8 : vector<16xf32> to vector<16x1xf32>
    %cst_7 = arith.constant 3.200000e+01 : f32
    %10 = vector.broadcast %cst_7 : f32 to vector<16x1xf32>
    %11 = arith.divf %9, %10 : vector<16x1xf32>
    %12 = vector.broadcast %11 : vector<16x1xf32> to vector<16x32xf32>
    %13 = arith.subf %3, %12 : vector<16x32xf32>
    %14 = arith.mulf %13, %13 : vector<16x32xf32>
    %cst_8 = arith.constant dense<0.000000e+00> : vector<16xf32>
    %15 = vector.multi_reduction <add>, %14, %cst_8 [1] : vector<16x32xf32> to vector<16xf32>
    %16 = vector.shape_cast %15 : vector<16xf32> to vector<16x1xf32>
    %cst_9 = arith.constant 3.200000e+01 : f32
    %17 = vector.broadcast %cst_9 : f32 to vector<16x1xf32>
    %18 = arith.divf %16, %17 : vector<16x1xf32>
    %19 = vector.broadcast %11 : vector<16x1xf32> to vector<16x32xf32>
    %20 = arith.subf %3, %19 : vector<16x32xf32>
    %cst_10 = arith.constant 9.99999974E-6 : f32
    %21 = vector.broadcast %cst_10 : f32 to vector<16x1xf32>
    %22 = arith.addf %18, %21 : vector<16x1xf32>
    %23 = math.rsqrt %22 : vector<16x1xf32>
    %24 = vector.broadcast %23 : vector<16x1xf32> to vector<16x32xf32>
    %25 = arith.mulf %20, %24 : vector<16x32xf32>
    %26 = vector.shape_cast %5 : vector<32xf32> to vector<1x32xf32>
    %27 = vector.broadcast %26 : vector<1x32xf32> to vector<16x32xf32>
    %28 = arith.mulf %25, %27 : vector<16x32xf32>
    %29 = vector.shape_cast %7 : vector<32xf32> to vector<1x32xf32>
    %30 = vector.broadcast %29 : vector<1x32xf32> to vector<16x32xf32>
    %31 = arith.addf %28, %30 : vector<16x32xf32>
    %c0_11 = arith.constant 0 : index
    %c0_12 = arith.constant 0 : index
    %c0_13 = arith.constant 0 : index
    %32 = vector.load %arg3[%c0_11, %c0_12, %c0_13] : memref<1x128x128xbf16, #tpu.memory_space<vmem>>, vector<1x32x128xbf16>
    %33 = vector.shape_cast %32 : vector<1x32x128xbf16> to vector<32x128xbf16>
    %34 = arith.truncf %31 : vector<16x32xf32> to vector<16x32xbf16>
    %cst_14 = arith.constant dense<0.000000e+00> : vector<16x128xf32>
    %35 = tpu.matmul %34, %33, %cst_14 {dimension_numbers = #tpu.dot_dimension_numbers<[1], [0], [0], [1], [0, 0, 1, 1], [], []>} : vector<16x32xbf16>, vector<32x128xbf16>, vector<16x128xf32> -> vector<16x128xf32>
    %36 = vector.extract_strided_slice %35 {offsets = [0, 0], sizes = [16, 32], strides = [1, 1]} : vector<16x128xf32> to vector<16x32xf32>
    %c0_15 = arith.constant 0 : index
    %c2 = arith.constant 2 : index
    %c0_16 = arith.constant 0 : index
    %37 = vector.load %arg4[%c0_15, %c2, %c0_16] : memref<1x9x32xf32, #tpu.memory_space<vmem>>, vector<1x1x32xf32>
    %38 = vector.shape_cast %37 : vector<1x1x32xf32> to vector<32xf32>
    %39 = vector.shape_cast %38 : vector<32xf32> to vector<1x32xf32>
    %40 = vector.broadcast %39 : vector<1x32xf32> to vector<16x32xf32>
    %41 = arith.addf %36, %40 : vector<16x32xf32>
    %42 = vector.extract_strided_slice %35 {offsets = [0, 32], sizes = [16, 32], strides = [1, 1]} : vector<16x128xf32> to vector<16x32xf32>
    %c0_17 = arith.constant 0 : index
    %c3 = arith.constant 3 : index
    %c0_18 = arith.constant 0 : index
    %43 = vector.load %arg4[%c0_17, %c3, %c0_18] : memref<1x9x32xf32, #tpu.memory_space<vmem>>, vector<1x1x32xf32>
    %44 = vector.shape_cast %43 : vector<1x1x32xf32> to vector<32xf32>
    %45 = vector.shape_cast %44 : vector<32xf32> to vector<1x32xf32>
    %46 = vector.broadcast %45 : vector<1x32xf32> to vector<16x32xf32>
    %47 = arith.addf %42, %46 : vector<16x32xf32>
    %48 = vector.extract_strided_slice %35 {offsets = [0, 64], sizes = [16, 32], strides = [1, 1]} : vector<16x128xf32> to vector<16x32xf32>
    %c0_19 = arith.constant 0 : index
    %c4 = arith.constant 4 : index
    %c0_20 = arith.constant 0 : index
    %49 = vector.load %arg4[%c0_19, %c4, %c0_20] : memref<1x9x32xf32, #tpu.memory_space<vmem>>, vector<1x1x32xf32>
    %50 = vector.shape_cast %49 : vector<1x1x32xf32> to vector<32xf32>
    %51 = vector.shape_cast %50 : vector<32xf32> to vector<1x32xf32>
    %52 = vector.broadcast %51 : vector<1x32xf32> to vector<16x32xf32>
    %53 = arith.addf %48, %52 : vector<16x32xf32>
    %c0_21 = arith.constant 0 : index
    %c0_22 = arith.constant 0 : index
    %54 = vector.load %arg2[%c0_21, %c0_22] : memref<16x16xf32, #tpu.memory_space<vmem>>, vector<16x16xf32>
    %c0_23 = arith.constant 0 : index
    %c96 = arith.constant 96 : index
    %c0_24 = arith.constant 0 : index
    %55 = vector.load %arg3[%c0_23, %c96, %c0_24] : memref<1x128x128xbf16, #tpu.memory_space<vmem>>, vector<1x32x128xbf16>
    %56 = vector.shape_cast %55 : vector<1x32x128xbf16> to vector<32x128xbf16>
    %57 = vector.extract_strided_slice %56 {offsets = [0, 0], sizes = [32, 32], strides = [1, 1]} : vector<32x128xbf16> to vector<32x32xbf16>
    %58 = vector.extract_strided_slice %41 {offsets = [0, 0], sizes = [16, 16], strides = [1, 1]} : vector<16x32xf32> to vector<16x16xf32>
    %59 = vector.extract_strided_slice %47 {offsets = [0, 0], sizes = [16, 16], strides = [1, 1]} : vector<16x32xf32> to vector<16x16xf32>
    %60 = arith.truncf %58 : vector<16x16xf32> to vector<16x16xbf16>
    %61 = arith.truncf %59 : vector<16x16xf32> to vector<16x16xbf16>
    %cst_25 = arith.constant dense<0.000000e+00> : vector<16x16xf32>
    %62 = tpu.matmul %60, %61, %cst_25 {dimension_numbers = #tpu.dot_dimension_numbers<[1], [1], [0], [0], [0, 0, 1, 0], [], []>} : vector<16x16xbf16>, vector<16x16xbf16>, vector<16x16xf32> -> vector<16x16xf32>
    %cst_26 = arith.constant 2.500000e-01 : f32
    %63 = vector.broadcast %cst_26 : f32 to vector<16x16xf32>
    %64 = arith.mulf %62, %63 : vector<16x16xf32>
    %65 = arith.addf %64, %54 : vector<16x16xf32>
    %cst_27 = arith.constant dense<0xFF800000> : vector<16xf32>
    %66 = vector.multi_reduction <maximumf>, %65, %cst_27 [1] : vector<16x16xf32> to vector<16xf32>
    %67 = vector.shape_cast %66 : vector<16xf32> to vector<16x1xf32>
    %68 = vector.broadcast %67 : vector<16x1xf32> to vector<16x16xf32>
    %69 = arith.subf %65, %68 : vector<16x16xf32>
    %70 = math.exp %69 : vector<16x16xf32>
    %cst_28 = arith.constant dense<0.000000e+00> : vector<16xf32>
    %71 = vector.multi_reduction <add>, %70, %cst_28 [1] : vector<16x16xf32> to vector<16xf32>
    %72 = vector.shape_cast %71 : vector<16xf32> to vector<16x1xf32>
    %73 = tpu.reciprocal %72 {approx = true} : vector<16x1xf32> -> vector<16x1xf32>
    %74 = vector.broadcast %73 : vector<16x1xf32> to vector<16x16xf32>
    %75 = arith.mulf %70, %74 : vector<16x16xf32>
    %76 = vector.extract_strided_slice %53 {offsets = [0, 0], sizes = [16, 16], strides = [1, 1]} : vector<16x32xf32> to vector<16x16xf32>
    %77 = arith.truncf %75 : vector<16x16xf32> to vector<16x16xbf16>
    %78 = arith.truncf %76 : vector<16x16xf32> to vector<16x16xbf16>
    %cst_29 = arith.constant dense<0.000000e+00> : vector<16x16xf32>
    %79 = tpu.matmul %77, %78, %cst_29 {dimension_numbers = #tpu.dot_dimension_numbers<[1], [0], [0], [1], [0, 0, 1, 1], [], []>} : vector<16x16xbf16>, vector<16x16xbf16>, vector<16x16xf32> -> vector<16x16xf32>
    %80 = vector.extract_strided_slice %57 {offsets = [0, 0], sizes = [16, 32], strides = [1, 1]} : vector<32x32xbf16> to vector<16x32xbf16>
    %81 = arith.truncf %79 : vector<16x16xf32> to vector<16x16xbf16>
    %cst_30 = arith.constant dense<0.000000e+00> : vector<16x32xf32>
    %82 = tpu.matmul %81, %80, %cst_30 {dimension_numbers = #tpu.dot_dimension_numbers<[1], [0], [0], [1], [0, 0, 1, 1], [], []>} : vector<16x16xbf16>, vector<16x32xbf16>, vector<16x32xf32> -> vector<16x32xf32>
    %83 = vector.extract_strided_slice %41 {offsets = [0, 16], sizes = [16, 16], strides = [1, 1]} : vector<16x32xf32> to vector<16x16xf32>
    %84 = vector.extract_strided_slice %47 {offsets = [0, 16], sizes = [16, 16], strides = [1, 1]} : vector<16x32xf32> to vector<16x16xf32>
    %85 = arith.truncf %83 : vector<16x16xf32> to vector<16x16xbf16>
    %86 = arith.truncf %84 : vector<16x16xf32> to vector<16x16xbf16>
    %cst_31 = arith.constant dense<0.000000e+00> : vector<16x16xf32>
    %87 = tpu.matmul %85, %86, %cst_31 {dimension_numbers = #tpu.dot_dimension_numbers<[1], [1], [0], [0], [0, 0, 1, 0], [], []>} : vector<16x16xbf16>, vector<16x16xbf16>, vector<16x16xf32> -> vector<16x16xf32>
    %cst_32 = arith.constant 2.500000e-01 : f32
    %88 = vector.broadcast %cst_32 : f32 to vector<16x16xf32>
    %89 = arith.mulf %87, %88 : vector<16x16xf32>
    %90 = arith.addf %89, %54 : vector<16x16xf32>
    %cst_33 = arith.constant dense<0xFF800000> : vector<16xf32>
    %91 = vector.multi_reduction <maximumf>, %90, %cst_33 [1] : vector<16x16xf32> to vector<16xf32>
    %92 = vector.shape_cast %91 : vector<16xf32> to vector<16x1xf32>
    %93 = vector.broadcast %92 : vector<16x1xf32> to vector<16x16xf32>
    %94 = arith.subf %90, %93 : vector<16x16xf32>
    %95 = math.exp %94 : vector<16x16xf32>
    %cst_34 = arith.constant dense<0.000000e+00> : vector<16xf32>
    %96 = vector.multi_reduction <add>, %95, %cst_34 [1] : vector<16x16xf32> to vector<16xf32>
    %97 = vector.shape_cast %96 : vector<16xf32> to vector<16x1xf32>
    %98 = tpu.reciprocal %97 {approx = true} : vector<16x1xf32> -> vector<16x1xf32>
    %99 = vector.broadcast %98 : vector<16x1xf32> to vector<16x16xf32>
    %100 = arith.mulf %95, %99 : vector<16x16xf32>
    %101 = vector.extract_strided_slice %53 {offsets = [0, 16], sizes = [16, 16], strides = [1, 1]} : vector<16x32xf32> to vector<16x16xf32>
    %102 = arith.truncf %100 : vector<16x16xf32> to vector<16x16xbf16>
    %103 = arith.truncf %101 : vector<16x16xf32> to vector<16x16xbf16>
    %cst_35 = arith.constant dense<0.000000e+00> : vector<16x16xf32>
    %104 = tpu.matmul %102, %103, %cst_35 {dimension_numbers = #tpu.dot_dimension_numbers<[1], [0], [0], [1], [0, 0, 1, 1], [], []>} : vector<16x16xbf16>, vector<16x16xbf16>, vector<16x16xf32> -> vector<16x16xf32>
    %105 = vector.extract_strided_slice %57 {offsets = [16, 0], sizes = [16, 32], strides = [1, 1]} : vector<32x32xbf16> to vector<16x32xbf16>
    %106 = arith.truncf %104 : vector<16x16xf32> to vector<16x16xbf16>
    %cst_36 = arith.constant dense<0.000000e+00> : vector<16x32xf32>
    %107 = tpu.matmul %106, %105, %cst_36 {dimension_numbers = #tpu.dot_dimension_numbers<[1], [0], [0], [1], [0, 0, 1, 1], [], []>} : vector<16x16xbf16>, vector<16x32xbf16>, vector<16x32xf32> -> vector<16x32xf32>
    %108 = arith.addf %82, %107 : vector<16x32xf32>
    %109 = arith.addf %3, %108 : vector<16x32xf32>
    %c0_37 = arith.constant 0 : index
    %c5 = arith.constant 5 : index
    %c0_38 = arith.constant 0 : index
    %110 = vector.load %arg4[%c0_37, %c5, %c0_38] : memref<1x9x32xf32, #tpu.memory_space<vmem>>, vector<1x1x32xf32>
    %111 = vector.shape_cast %110 : vector<1x1x32xf32> to vector<32xf32>
    %112 = vector.shape_cast %111 : vector<32xf32> to vector<1x32xf32>
    %113 = vector.broadcast %112 : vector<1x32xf32> to vector<16x32xf32>
    %114 = arith.addf %109, %113 : vector<16x32xf32>
    %c0_39 = arith.constant 0 : index
    %c6 = arith.constant 6 : index
    %c0_40 = arith.constant 0 : index
    %115 = vector.load %arg4[%c0_39, %c6, %c0_40] : memref<1x9x32xf32, #tpu.memory_space<vmem>>, vector<1x1x32xf32>
    %116 = vector.shape_cast %115 : vector<1x1x32xf32> to vector<32xf32>
    %c0_41 = arith.constant 0 : index
    %c7 = arith.constant 7 : index
    %c0_42 = arith.constant 0 : index
    %117 = vector.load %arg4[%c0_41, %c7, %c0_42] : memref<1x9x32xf32, #tpu.memory_space<vmem>>, vector<1x1x32xf32>
    %118 = vector.shape_cast %117 : vector<1x1x32xf32> to vector<32xf32>
    %cst_43 = arith.constant dense<0.000000e+00> : vector<16xf32>
    %119 = vector.multi_reduction <add>, %114, %cst_43 [1] : vector<16x32xf32> to vector<16xf32>
    %120 = vector.shape_cast %119 : vector<16xf32> to vector<16x1xf32>
    %cst_44 = arith.constant 3.200000e+01 : f32
    %121 = vector.broadcast %cst_44 : f32 to vector<16x1xf32>
    %122 = arith.divf %120, %121 : vector<16x1xf32>
    %123 = vector.broadcast %122 : vector<16x1xf32> to vector<16x32xf32>
    %124 = arith.subf %114, %123 : vector<16x32xf32>
    %125 = arith.mulf %124, %124 : vector<16x32xf32>
    %cst_45 = arith.constant dense<0.000000e+00> : vector<16xf32>
    %126 = vector.multi_reduction <add>, %125, %cst_45 [1] : vector<16x32xf32> to vector<16xf32>
    %127 = vector.shape_cast %126 : vector<16xf32> to vector<16x1xf32>
    %cst_46 = arith.constant 3.200000e+01 : f32
    %128 = vector.broadcast %cst_46 : f32 to vector<16x1xf32>
    %129 = arith.divf %127, %128 : vector<16x1xf32>
    %130 = vector.broadcast %122 : vector<16x1xf32> to vector<16x32xf32>
    %131 = arith.subf %114, %130 : vector<16x32xf32>
    %cst_47 = arith.constant 9.99999974E-6 : f32
    %132 = vector.broadcast %cst_47 : f32 to vector<16x1xf32>
    %133 = arith.addf %129, %132 : vector<16x1xf32>
    %134 = math.rsqrt %133 : vector<16x1xf32>
    %135 = vector.broadcast %134 : vector<16x1xf32> to vector<16x32xf32>
    %136 = arith.mulf %131, %135 : vector<16x32xf32>
    %137 = vector.shape_cast %116 : vector<32xf32> to vector<1x32xf32>
    %138 = vector.broadcast %137 : vector<1x32xf32> to vector<16x32xf32>
    %139 = arith.mulf %136, %138 : vector<16x32xf32>
    %140 = vector.shape_cast %118 : vector<32xf32> to vector<1x32xf32>
    %141 = vector.broadcast %140 : vector<1x32xf32> to vector<16x32xf32>
    %142 = arith.addf %139, %141 : vector<16x32xf32>
    %c0_48 = arith.constant 0 : index
    %c32 = arith.constant 32 : index
    %c0_49 = arith.constant 0 : index
    %143 = vector.load %arg3[%c0_48, %c32, %c0_49] : memref<1x128x128xbf16, #tpu.memory_space<vmem>>, vector<1x32x128xbf16>
    %144 = vector.shape_cast %143 : vector<1x32x128xbf16> to vector<32x128xbf16>
    %145 = arith.truncf %142 : vector<16x32xf32> to vector<16x32xbf16>
    %cst_50 = arith.constant dense<0.000000e+00> : vector<16x128xf32>
    %146 = tpu.matmul %145, %144, %cst_50 {dimension_numbers = #tpu.dot_dimension_numbers<[1], [0], [0], [1], [0, 0, 1, 1], [], []>} : vector<16x32xbf16>, vector<32x128xbf16>, vector<16x128xf32> -> vector<16x128xf32>
    %c0_51 = arith.constant 0 : index
    %c0_52 = arith.constant 0 : index
    %c0_53 = arith.constant 0 : index
    %147 = vector.load %arg5[%c0_51, %c0_52, %c0_53] : memref<1x1x128xf32, #tpu.memory_space<vmem>>, vector<1x1x128xf32>
    %148 = vector.shape_cast %147 : vector<1x1x128xf32> to vector<128xf32>
    %149 = vector.shape_cast %148 : vector<128xf32> to vector<1x128xf32>
    %150 = vector.broadcast %149 : vector<1x128xf32> to vector<16x128xf32>
    %151 = arith.addf %146, %150 : vector<16x128xf32>
    %cst_54 = arith.constant 5.000000e-01 : f32
    %152 = vector.broadcast %cst_54 : f32 to vector<16x128xf32>
    %153 = arith.mulf %152, %151 : vector<16x128xf32>
    %cst_55 = arith.constant 4.471500e-02 : f32
    %154 = vector.broadcast %cst_55 : f32 to vector<16x128xf32>
    %155 = arith.mulf %154, %151 : vector<16x128xf32>
    %156 = arith.mulf %155, %151 : vector<16x128xf32>
    %157 = arith.mulf %156, %151 : vector<16x128xf32>
    %158 = arith.addf %151, %157 : vector<16x128xf32>
    %cst_56 = arith.constant 0.797884583 : f32
    %159 = vector.broadcast %cst_56 : f32 to vector<16x128xf32>
    %160 = arith.mulf %159, %158 : vector<16x128xf32>
    %161 = math.tanh %160 : vector<16x128xf32>
    %cst_57 = arith.constant 1.000000e+00 : f32
    %162 = vector.broadcast %cst_57 : f32 to vector<16x128xf32>
    %163 = arith.addf %162, %161 : vector<16x128xf32>
    %164 = arith.mulf %153, %163 : vector<16x128xf32>
    %c0_58 = arith.constant 0 : index
    %c64 = arith.constant 64 : index
    %c0_59 = arith.constant 0 : index
    %165 = vector.load %arg3[%c0_58, %c64, %c0_59] : memref<1x128x128xbf16, #tpu.memory_space<vmem>>, vector<1x32x128xbf16>
    %166 = vector.shape_cast %165 : vector<1x32x128xbf16> to vector<32x128xbf16>
    %167 = arith.truncf %164 : vector<16x128xf32> to vector<16x128xbf16>
    %cst_60 = arith.constant dense<0.000000e+00> : vector<16x32xf32>
    %168 = tpu.matmul %167, %166, %cst_60 {dimension_numbers = #tpu.dot_dimension_numbers<[1], [1], [0], [0], [0, 0, 1, 0], [], []>} : vector<16x128xbf16>, vector<32x128xbf16>, vector<16x32xf32> -> vector<16x32xf32>
    %c0_61 = arith.constant 0 : index
    %c8 = arith.constant 8 : index
    %c0_62 = arith.constant 0 : index
    %169 = vector.load %arg4[%c0_61, %c8, %c0_62] : memref<1x9x32xf32, #tpu.memory_space<vmem>>, vector<1x1x32xf32>
    %170 = vector.shape_cast %169 : vector<1x1x32xf32> to vector<32xf32>
    %171 = vector.shape_cast %170 : vector<32xf32> to vector<1x32xf32>
    %172 = vector.broadcast %171 : vector<1x32xf32> to vector<16x32xf32>
    %173 = arith.addf %168, %172 : vector<16x32xf32>
    %174 = arith.addf %114, %173 : vector<16x32xf32>
    %c0_63 = arith.constant 0 : index
    %c0_64 = arith.constant 0 : index
    %175 = vector.load %arg6[%c0_63, %c0_64] : memref<16x32xf32, #tpu.memory_space<vmem>>, vector<16x32xf32>
    tpu.vector_store %arg6[%c0_63, %c0_64], %174 {strides = array<i32>} : memref<16x32xf32, #tpu.memory_space<vmem>>, vector<16x32xf32>,
    return
  }
  func.func @transform_0(%arg0: i32) -> (i32, i32) {
    %c0_i32 = arith.constant 0 : i32
    %c0_i32_0 = arith.constant 0 : i32
    %c0_i32_1 = arith.constant 0 : i32
    return %c0_i32, %c0_i32_0 : i32, i32
  }
  func.func @transform_1(%arg0: i32) -> (i32, i32) {
    %c0_i32 = arith.constant 0 : i32
    %c0_i32_0 = arith.constant 0 : i32
    %c0_i32_1 = arith.constant 0 : i32
    return %c0_i32, %c0_i32_0 : i32, i32
  }
  func.func @transform_2(%arg0: i32) -> (i32, i32, i32) {
    %c0_i32 = arith.constant 0 : i32
    %c0_i32_0 = arith.constant 0 : i32
    %c0_i32_1 = arith.constant 0 : i32
    return %arg0, %c0_i32, %c0_i32_0 : i32, i32, i32
  }
  func.func @transform_3(%arg0: i32) -> (i32, i32, i32) {
    %c0_i32 = arith.constant 0 : i32
    %c0_i32_0 = arith.constant 0 : i32
    %c0_i32_1 = arith.constant 0 : i32
    return %arg0, %c0_i32, %c0_i32_0 : i32, i32, i32
  }
  func.func @transform_4(%arg0: i32) -> (i32, i32, i32) {
    %c0_i32 = arith.constant 0 : i32
    %c0_i32_0 = arith.constant 0 : i32
    %c0_i32_1 = arith.constant 0 : i32
    return %arg0, %c0_i32, %c0_i32_0 : i32, i32, i32
  }
  func.func @transform_5(%arg0: i32) -> (i32, i32) {
    %c0_i32 = arith.constant 0 : i32
    %c0_i32_0 = arith.constant 0 : i32
    %c0_i32_1 = arith.constant 0 : i32
    return %c0_i32, %c0_i32_0 : i32, i32
  }
}

</mosaic_0001>

<bundles_post_ra>
// kernel: hf_model_list_forward.1
= control target key start
LH: loop header
LB: loop body
LE: loop exit
PB: predicated region body
PF: predicated region fallthrough
CT: control target
= control target key end

     0   :  { %10 = vsyncpa [#allocation3], 0  ;;  %s1285_s18 = smov 0   ;;  %s1466_s0 = inlined_call_operand.vmem [shape: f32[16,32], index: 0, kind: input, shape index: {}]   ;;  %s1467_s1 = inlined_call_operand.vmem [shape: f32[16,16], index: 1, kind: input, shape index: {}]   ;;  %s1468_s2 = inlined_call_operand.vmem [shape: bf16[2,128,128], index: 2, kind: input, shape index: {}]   ;;  %s1469_s3 = inlined_call_operand.vmem [shape: f32[2,9,32], index: 3, kind: input, shape index: {}]   ;;  %s1470_s4 = inlined_call_operand.vmem [shape: f32[2,1,128], index: 4, kind: input, shape index: {}]   ;;  %s1471_s5 = inlined_call_operand.hbm [shape: f32[16,32], index: 5, kind: output, shape index: {}]  }
   0x1 LB: > { %s1291_s19 = sadd.s32 4294967295, %s1242_s18   ;;  %p1026_p0 = scmp.ge.s32.totalorder %s1242_s18, 1  ;;  %s1242_s18 = sphi %s1285_s18, %s16_s18  }
   0x2   : > { %p201_p1 = scmp.lt.s32.totalorder %s1242_s18, 3 }
   0x4   : > { %p202_p2 = pnand %p1026_p0, %p201_p1 }
   0x5   : > { %p232_p3 = scmp.lt.s32.totalorder (!%p202_p2), %s1291_s19, 1  ;;  %p1031_p4 = scmp.ne.s32.totalorder (!%p202_p2), %s1291_s19, 0 }
   0x6   : > { %205 = sbr.rel (%p202_p2) target bundleno = 2457 (0x999), region = 40 }
   0xd   : > { %s1297_s20 = scalar_select %p232_p3, %s1291_s19, 1 }
   0xe   : > { %249 = sbr.rel (%p1031_p4) target bundleno = 21 (0x15), region = 44  ;;  %v250_v0 = vld [vmem:[%s1466_s0] sm:$0xff] (!%p1031_p4)  ;;  %vm252_vm0 = vcmask (!%p1031_p4), 261120   ;;  %v251_v1 = vld [vmem:[%s1466_s0 + $0x8] sm:$0xff] (!%p1031_p4) }
   0xf   : > { %s1062_s21 = sshll.u32 %s1297_s20, 6  ;;  %s1063_s22 = sshll.u32 %s1297_s20, 4  ;;  %253 = vst.msk [vmem:[#allocation2] sm:$0xff] (!%p1031_p4), %vm252_vm0, %v250_v0  ;;  %254 = vst.msk [vmem:[#allocation2 + $0x8] sm:$0xff] (!%p1031_p4), %vm252_vm0, %v251_v1 }
  0x10   : > { %s1304_s25 = scalar_lea.vmem %s1468_s2, %s1062_s21  ;;  %s1309_s28 = scalar_lea.vmem %s1469_s3, %s1063_s22 }
  0x11   : > { %s244_s6 = scalar_lea.vmem %s1470_s4, %s1297_s20 }
  0x15 PF: > { %vm259_vm1 = vcmask 261120   ;;  %v1170_v16 = vld [vmem:[%s1304_s25] sm:$0xff]   ;;  %v1244_v17 = vmov 0.0   ;;  %v1171_v18 = vld [vmem:[%s1304_s25 + $0x8] sm:$0xff]   ;;  %vm1245_vm2 = vmmov 0   ;;  %s1246_s11 = smov 32  }
  0x16   : > { %v1322_v2 = vld [vmem:[#allocation2] sm:$0xff]  ;;  %v1324_v3 = vld [vmem:[#allocation2 + $0x8] sm:$0xff]  ;;  %1085 = vmatprep.subr.bf16.mxu1 %v1244_v17  ;;  %1099 = vmatprep.subr.bf16.mxu0 %v1244_v17  ;;  %s1247_s12 = smov 96   ;;  %s1248_s13 = smov 80   ;;  %vm400_vm3 = vcmask 130048  }
  0x17   : > { %v260_v4 = vsel %vm259_vm1, %v1322_v2, 0.0  ;;  %v263_v5 = vsel %vm259_vm1, %v1324_v3, 0.0  ;;  %1086 = vmatpush3.bf16.msra.mxu1 %v1170_v16  ;;  %1089 = vmatprep.mubr.msk.bf16.mxu1 %vm1245_vm2, %v1244_v17  ;;  %v1038_v19 = vld [vmem:[%s1309_s28 + $0x3] ss:$0 sm:$0xff]  ;;  %v1032_v28 = vld [vmem:[%s1309_s28] ss:$0 sm:$0xff] }
  0x18   : > { %261 = vadd.xlane.f32.xlu0 %v260_v4  ;;  %1087 = vmatprep.subr.bf16.mxu1 %v1244_v17  ;;  %v1033_v32 = vld [vmem:[%s1309_s28 + $0x1] ss:$0 sm:$0xff]  ;;  %v1037_v38 = vld [vmem:[%s1309_s28 + $0x2] ss:$0 sm:$0xff]  ;;  %s1249_s14 = smov 112   ;;  %v390_v59 = vld [vmem:[%s1467_s1 + $0x8] sm:$0xff] }
  0x19   : > { %1101 = vmatprep.mubr.msk.bf16.mxu0 %vm1245_vm2, %v1244_v17  ;;  %v389_v55 = vld [vmem:[%s1467_s1] sm:$0xff]  ;;  %s1250_s22 = smov 64   ;;  %s1251_s23 = smov 48  }
  0x1a   : > { %s1252_s20 = smov [#allocation2]   ;;  %p1149_p5 = scmp.eq.s32.totalorder %s1291_s19, 1 }
  0x1b   : > { %1088 = vmatpush3.bf16.msra.mxu1 %v1171_v18 }
  0x1c   : > { %264 = vadd.xlane.f32.xlu0 %v263_v5  ;;  %1093 = vmatprep.subr.bf16.mxu1 %v1244_v17 }
  0x32   : > { %373 = vrot.lane.b32.xlu0 %v1038_v19, %s1246_s11 }
  0xa5   : > { %v262_v6 = vpop.xlane.xlu0 %261 }
  0xa6   : > { %v267_v7 = vmul.f32 0.03125, %v262_v6 }
  0xa8   : > { %v269_v8 = vsub.f32 %v1322_v2, %v267_v7 }
  0xa9   : > { %v265_v9 = vpop.xlane.xlu0 %264 }
  0xaa   : > { %v268_v10 = vmul.f32 0.03125, %v265_v9  ;;  %v271_v11 = vmul.f32 %v269_v8, %v269_v8 }
  0xac   : > { %v270_v12 = vsub.f32 %v1324_v3, %v268_v10  ;;  %v273_v13 = vsel %vm259_vm1, %v271_v11, 0.0 }
  0xad   : > { %274 = vadd.xlane.f32.xlu1 %v273_v13  ;;  %v374_v39 = vpop.permute.xlu0 %373 }
  0xae   : > { %v272_v14 = vmul.f32 %v270_v12, %v270_v12 }
  0xb0   : > { %v276_v15 = vsel %vm259_vm1, %v272_v14, 0.0  ;;  %v1039_v14 = vld [vmem:[%s1309_s28 + $0x4] ss:$0 sm:$0xff] }
  0xb1   : > { %277 = vadd.xlane.f32.xlu1 %v276_v15 }
 0x13a   : > { %v275_v20 = vpop.xlane.xlu1 %274 }
 0x13b   : > { %v279_v21 = vmul.f32 0.03125, %v275_v20 }
 0x13d   : > { %v281_v22 = vadd.f32 1e-05, %v279_v21 }
 0x13e   : > { %v278_v23 = vpop.xlane.xlu1 %277 }
 0x13f   : > { %1178 = vrsqrt.f32 %v281_v22  ;;  %v280_v24 = vmul.f32 0.03125, %v278_v23 }
 0x141   : > { %v282_v25 = vadd.f32 1e-05, %v280_v24 }
 0x143   : > { %1180 = vrsqrt.f32 %v282_v25 }
 0x149   : > { %v1179_v26 = vpop.eup %1178 }
 0x14a   : > { %v285_v27 = vmul.f32 %v1179_v26, %v269_v8 }
 0x14c   : > { %v291_v31 = vmul.f32 %v1032_v28, %v285_v27 }
 0x14d   : > { %v1181_v29 = vpop.eup %1180 }
 0x14e   : > { %v286_v30 = vmul.f32 %v1181_v29, %v270_v12  ;;  %v297_v34 = vadd.f32 %v1033_v32, %v291_v31 }
 0x150   : > { %v292_v33 = vmul.f32 %v1032_v28, %v286_v30 }
 0x152   : > { %v298_v35 = vadd.f32 %v1033_v32, %v292_v33 }
 0x154   : > { %v303_v36 = vpack.c.bf16 %v298_v35, %v297_v34 }
 0x156   : > { %1090 = vmatmul.mubr.msk.bf16.vlgmr.msra.gmra.mrb[0].mxu1 %vm259_vm1, %v303_v36 }
 0x157   : > { %1095 = vmatprep.mubr.msk.bf16.mxu1 %vm1245_vm2, %v1244_v17 }
 0x229   : > { %v1350_v37 = vpop.f32.mrb[0].mxu1 }
 0x22a   : > { %v1091_v40 = vpop.f32.mrb[1].mxu1  ;;  %v365_v42 = vadd.f32 %v1037_v38, %v1350_v37  ;;  %v376_v43 = vadd.f32 %v374_v39, %v1350_v37 }
 0x22b   : > { %v1353_v41 = vpop.f32.mrb[2].mxu1 }
 0x22c   : > { %v366_v44 = vadd.f32 %v1037_v38, %v1353_v41  ;;  %v377_v45 = vadd.f32 %v374_v39, %v1353_v41  ;;  %v1092_v46 = vpop.f32.mrb[3].mxu1 }
 0x22e   : > { %v396_v47 = vpack.c.bf16 %v377_v45, %v376_v43  ;;  %v395_v48 = vpack.c.bf16 %v366_v44, %v365_v42 }
 0x230   : > { %398 = vrot.lane.b32.xlu1 %v396_v47, %s1247_s12 }
 0x234   : > { %528 = vrot.lane.b32.xlu1 %v396_v47, %s1248_s13 }
 0x238   : > { %526 = vrot.lane.b32.xlu1 %v395_v48, %s1249_s14 }
 0x2a2   : > { %v399_v49 = vpop.permute.xlu1 %398 }
 0x2a3   : > { %v405_v50 = vsel %vm400_vm3, %v399_v49, 0 }
 0x2a4   : > { %1094 = vmatpush3.bf16.xpose.msra.mxu1 %v405_v50 }
 0x2a5   : > { %1105 = vmatprep.subr.bf16.mxu1 %v1244_v17 }
 0x2a6   : > { %v529_v51 = vpop.permute.xlu1 %528 }
 0x2a7   : > { %v534_v52 = vsel %vm400_vm3, %v529_v51, 0 }
 0x2aa   : > { %v527_v53 = vpop.permute.xlu1 %526 }
 0x2ab   : > { %1096 = vmatmul.mubr.msk.bf16.vlgmr.msra.gmra.mrb[4].mxu1 %vm400_vm3, %v395_v48 }
 0x2ac   : > { %1106 = vmatpush3.bf16.xpose.msra.mxu1 %v534_v52  ;;  %1107 = vmatprep.mubr.msk.bf16.mxu1 %vm1245_vm2, %v1244_v17 }
 0x2ad   : > { %1117 = vmatprep.subr.bf16.mxu1 %v1244_v17 }
 0x2b3   : > { %1108 = vmatmul.mubr.msk.bf16.vlgmr.msra.gmra.mrb[8].mxu1 %vm400_vm3, %v527_v53 }
 0x2b4   : > { %1119 = vmatprep.mubr.msk.bf16.mxu1 %vm1245_vm2, %v1244_v17 }
 0x37e   : > { %v441_v54 = vpop.f32.mrb[4].mxu1 }
 0x37f   : > { %v448_v56 = vmul.f32 0.25, %v441_v54  ;;  %v1097_v57 = vpop.f32.mrb[5].mxu1 }
 0x380   : > { %v444_v58 = vpop.f32.mrb[6].mxu1  ;;  %v1173_v57 = vld [vmem:[%s1304_s25 + $0x38] sm:$0xff]  }
 0x381   : > { %v449_v60 = vmul.f32 0.25, %v444_v58  ;;  %v1098_v61 = vpop.f32.mrb[7].mxu1  ;;  %v450_v62 = vadd.f32 %v448_v56, %v389_v55  ;;  %v1172_v56 = vld [vmem:[%s1304_s25 + $0x30] sm:$0xff]   ;;  %1118 = vmatpush3.bf16.msra.mxu1 %v1173_v57 }
 0x382   : > { %1129 = vmatprep.subr.bf16.mxu1 %v1244_v17 }
 0x383   : > { %v452_v63 = vsel %vm400_vm3, %v450_v62, -inf  ;;  %v451_v0 = vadd.f32 %v449_v60, %v390_v59 }
 0x384   : > { %453 = vmax.xlane.f32.xlu0 %v452_v63 }
 0x385   : > { %v455_v1 = vsel %vm400_vm3, %v451_v0, -inf }
 0x386   : > { %456 = vmax.xlane.f32.xlu1 %v455_v1  ;;  %v570_v4 = vpop.f32.mrb[8].mxu1 }
 0x387   : > { %v577_v5 = vmul.f32 0.25, %v570_v4  ;;  %v1109_v6 = vpop.f32.mrb[9].mxu1 }
 0x388   : > { %v573_v7 = vpop.f32.mrb[10].mxu1 }
 0x389   : > { %v578_v8 = vmul.f32 0.25, %v573_v7  ;;  %v1110_v9 = vpop.f32.mrb[11].mxu1  ;;  %v579_v10 = vadd.f32 %v577_v5, %v389_v55 }
 0x38b   : > { %v581_v11 = vsel %vm400_vm3, %v579_v10, -inf  ;;  %v580_v12 = vadd.f32 %v578_v8, %v390_v59 }
 0x38c   : > { %582 = vmax.xlane.f32.xlu0 %v581_v11 }
 0x38d   : > { %v584_v13 = vsel %vm400_vm3, %v580_v12, -inf }
 0x390   : > { %585 = vmax.xlane.f32.xlu0 %v584_v13  ;;  %v1048_v13 = vld [vmem:[%s1309_s28 + $0x5] ss:$0 sm:$0xff] }
 0x3a6   : > { %384 = vrot.lane.b32.xlu0 %v1039_v14, %s1250_s22 }
 0x411   : > { %v454_v15 = vpop.xlane.xlu0 %453 }
 0x412   : > { %v458_v16 = vsub.f32 %v450_v62, %v454_v15 }
 0x413   : > { %v457_v18 = vpop.xlane.xlu1 %456 }
 0x414   : > { %v460_v19 = vmul.f32 1.442695, %v458_v16  ;;  %v459_v20 = vsub.f32 %v451_v0, %v457_v18 }
 0x416   : > { %1182 = vpow2.f32 %v460_v19  ;;  %v462_v21 = vmul.f32 1.442695, %v459_v20 }
 0x418   : > { %1184 = vpow2.f32 %v462_v21 }
 0x419   : > { %v583_v22 = vpop.xlane.xlu0 %582 }
 0x41a   : > { %v587_v23 = vsub.f32 %v579_v10, %v583_v22 }
 0x41c   : > { %v589_v24 = vmul.f32 1.442695, %v587_v23 }
 0x41d   : > { %v586_v25 = vpop.xlane.xlu0 %585 }
 0x41e   : > { %1186 = vpow2.f32 %v589_v24  ;;  %v588_v26 = vsub.f32 %v580_v12, %v586_v25 }
 0x420   : > { %v1183_v27 = vpop.eup %1182  ;;  %v591_v28 = vmul.f32 1.442695, %v588_v26 }
 0x421   : > { %v385_v29 = vpop.permute.xlu0 %384  ;;  %v464_v30 = vsel %vm400_vm3, %v1183_v27, 0.0 }
 0x422   : > { %v1185_v31 = vpop.eup %1184  ;;  %1188 = vpow2.f32 %v591_v28  ;;  %v387_v32 = vadd.f32 %v385_v29, %v1350_v37  ;;  %v388_v33 = vadd.f32 %v385_v29, %v1353_v41  ;;  %465 = vadd.xlane.f32.xlu1 %v464_v30 }
 0x423   : > { %v467_v35 = vsel %vm400_vm3, %v1185_v31, 0.0 }
 0x424   : > { %v475_v34 = vpack.c.bf16 %v388_v33, %v387_v32  ;;  %v1174_v32 = vld [vmem:[%s1304_s25 + $0x10] sm:$0xff]   ;;  %v1175_v33 = vld [vmem:[%s1304_s25 + $0x18] sm:$0xff]  }
 0x426   : > { %604 = vrot.lane.b32.xlu0 %v475_v34, %s1251_s23  ;;  %468 = vadd.xlane.f32.xlu1 %v467_v35 }
 0x428   : > { %v1187_v36 = vpop.eup %1186 }
 0x429   : > { %v593_v38 = vsel %vm400_vm3, %v1187_v36, 0.0 }
 0x42a   : > { %594 = vadd.xlane.f32.xlu1 %v593_v38 }
 0x42c   : > { %v1189_v39 = vpop.eup %1188 }
 0x42d   : > { %v596_v40 = vsel %vm400_vm3, %v1189_v39, 0.0 }
 0x42e   : > { %597 = vadd.xlane.f32.xlu1 %v596_v40 }
 0x43f   : > { %477 = vrot.lane.b32.xlu1 %v475_v34, %s1250_s22 }
 0x498   : > { %v605_v50 = vpop.permute.xlu0 %604 }
 0x4af   : > { %v466_v37 = vpop.xlane.xlu1 %465 }
 0x4b0   : > { %1190 = vrcp.f32 %v466_v37 }
 0x4b3   : > { %v469_v41 = vpop.xlane.xlu1 %468 }
 0x4b4   : > { %1192 = vrcp.f32 %v469_v41 }
 0x4b7   : > { %v595_v42 = vpop.xlane.xlu1 %594 }
 0x4b8   : > { %1194 = vrcp.f32 %v595_v42  ;;  %v1049_v42 = vld [vmem:[%s1309_s28 + $0x6] ss:$0 sm:$0xff] }
 0x4ba   : > { %v1191_v44 = vpop.eup %1190 }
 0x4bb   : > { %v598_v43 = vpop.xlane.xlu1 %597  ;;  %v472_v47 = vmul.f32 %v1191_v44, %v1183_v27 }
 0x4bc   : > { %1196 = vrcp.f32 %v598_v43 }
 0x4be   : > { %v1193_v45 = vpop.eup %1192 }
 0x4bf   : > { %v478_v46 = vpop.permute.xlu1 %477  ;;  %v473_v48 = vmul.f32 %v1193_v45, %v1185_v31 }
 0x4c0   : > { %1100 = vmatpush3.bf16.msra.mxu0 %v478_v46  ;;  %v1050_v46 = vld [vmem:[%s1309_s28 + $0x7] ss:$0 sm:$0xff] }
 0x4c1   : > { %v474_v49 = vpack.c.bf16 %v473_v48, %v472_v47  ;;  %1111 = vmatprep.subr.bf16.mxu0 %v1244_v17 }
 0x4c2   : > { %v1195_v51 = vpop.eup %1194 }
 0x4c3   : > { %1102 = vmatmul.mubr.msk.bf16.vlgmr.msra.gmra.mrb[0].mxu0 %vm400_vm3, %v474_v49  ;;  %v601_v53 = vmul.f32 %v1195_v51, %v1187_v36  ;;  %v1176_v51 = vld [vmem:[%s1304_s25 + $0x20] sm:$0xff]  }
 0x4c4   : > { %1112 = vmatpush3.bf16.msra.mxu0 %v605_v50  ;;  %1113 = vmatprep.mubr.msk.bf16.mxu0 %vm1245_vm2, %v1244_v17 }
 0x4c5   : > { %1123 = vmatprep.subr.bf16.mxu0 %v1244_v17 }
 0x4c6   : > { %v1197_v52 = vpop.eup %1196 }
 0x4c7   : > { %v602_v54 = vmul.f32 %v1197_v52, %v1189_v39  ;;  %v1177_v52 = vld [vmem:[%s1304_s25 + $0x28] sm:$0xff]   ;;  %s960_s25 = sshll.u32 %s1252_s20, 4  ;;  %s961_s25 = int_to_ptr.vmem [resolvable:$true] %s960_s25 }
 0x4c8   : > { %s1206_s27 = scalar_lea.vmem %s961_s25, 256  ;;  %p1213_p9 = scmp.lt.s32.totalorder %s961_s25, %s961_s25 }
 0x4c9   : > { %v603_v55 = vpack.c.bf16 %v602_v54, %v601_v53  ;;  %v1051_v53 = vld [vmem:[%s244_s6] ss:$0 sm:$0xff]  ;;  %p1207_p6 = scmp.ne.s32.totalorder %s961_s25, %s1206_s27  ;;  %p1214_p10 = scmp.lt.s32.totalorder %s1206_s27, %s1206_s27 }
 0x4cb   : > { %1114 = vmatmul.mubr.msk.bf16.vlgmr.msra.gmra.mrb[4].mxu0 %vm400_vm3, %v603_v55  ;;  %p1208_p7 = pnand %p1207_p6, %p1149_p5  ;;  %p1215_p11 = por %p1214_p10, %p1213_p9 }
 0x4cc   : > { %1125 = vmatprep.mubr.msk.bf16.mxu0 %vm1245_vm2, %v1244_v17  ;;  %1124 = vmatpush3.bf16.msra.mxu0 %v1172_v56 }
 0x4cd   : > { %1137 = vmatprep.subr.bf16.mxu0 %v1244_v17  ;;  %p1209_p8 = pneg %p1208_p7 }
 0x4cf   : > { %p1216_p12 = pnand %p1215_p11, %p1209_p8 }
 0x596   : > { %v517_v58 = vpop.f32.mrb[0].mxu0 }
 0x597   : > { %v1103_v59 = vpop.f32.mrb[1].mxu0 }
 0x598   : > { %v520_v60 = vpop.f32.mrb[2].mxu0 }
 0x599   : > { %v524_v61 = vpack.c.bf16 %v520_v60, %v517_v58  ;;  %v1104_v62 = vpop.f32.mrb[3].mxu0 }
 0x59b   : > { %1126 = vmatmul.mubr.msk.bf16.vlgmr.msra.gmra.mrb[8].mxu0 %vm400_vm3, %v524_v61 }
 0x59c   : > { %1141 = vmatprep.mubr.msk.bf16.mxu0 %vm1245_vm2, %v1244_v17  ;;  %1138 = vmatpush3.bf16.xpose.msra.mxu0 %v1176_v51 }
 0x59d   : > { %1139 = vmatprep.subr.bf16.mxu0 %v1244_v17 }
 0x59e   : > { %v644_v63 = vpop.f32.mrb[4].mxu0 }
 0x59f   : > { %v1115_v0 = vpop.f32.mrb[5].mxu0 }
 0x5a0   : > { %v647_v1 = vpop.f32.mrb[6].mxu0 }
 0x5a1   : > { %v651_v4 = vpack.c.bf16 %v647_v1, %v644_v63  ;;  %v1116_v5 = vpop.f32.mrb[7].mxu0 }
 0x5a3   : > { %1120 = vmatmul.mubr.msk.bf16.vlgmr.msra.gmra.mrb[12].mxu1 %vm400_vm3, %v651_v4 }
 0x5a4   : > { %1133 = vmatprep.mubr.msk.bf16.mxu1 %vm1245_vm2, %v1244_v17  ;;  %1130 = vmatpush3.bf16.msra.mxu1 %v1174_v32 }
 0x5a5   : > { %1131 = vmatprep.subr.bf16.mxu1 %v1244_v17  ;;  %1140 = vmatpush3.bf16.xpose.msra.mxu0 %v1177_v52 }
 0x5a8   : > { %1132 = vmatpush3.bf16.msra.mxu1 %v1175_v33 }
 0x66e   : > { %v745_v6 = vpop.f32.mrb[8].mxu0 }
 0x66f   : > { %v1127_v7 = vpop.f32.mrb[9].mxu0 }
 0x670   : > { %v748_v8 = vpop.f32.mrb[10].mxu0 }
 0x671   : > { %v1128_v9 = vpop.f32.mrb[11].mxu0 }
 0x676   : > { %v695_v10 = vpop.f32.mrb[12].mxu1 }
 0x677   : > { %v746_v11 = vadd.f32 %v745_v6, %v695_v10  ;;  %v1121_v12 = vpop.f32.mrb[13].mxu1 }
 0x678   : > { %v698_v14 = vpop.f32.mrb[14].mxu1 }
 0x679   : > { %v752_v15 = vadd.f32 %v746_v11, %v1322_v2  ;;  %v749_v16 = vadd.f32 %v748_v8, %v698_v14  ;;  %v1122_v18 = vpop.f32.mrb[15].mxu1 }
 0x67b   : > { %v1408_v19 = vadd.f32 %v1048_v13, %v752_v15  ;;  %v753_v20 = vadd.f32 %v749_v16, %v1324_v3  ;;  %v1055_v16 = vld [vmem:[%s1309_s28 + $0x8] ss:$0 sm:$0xff] }
 0x67d   : > { %v1411_v21 = vadd.f32 %v1048_v13, %v753_v20  ;;  %v763_v22 = vsel %vm259_vm1, %v1408_v19, 0.0 }
 0x67e   : > { %764 = vadd.xlane.f32.xlu0 %v763_v22 }
 0x67f   : > { %v766_v23 = vsel %vm259_vm1, %v1411_v21, 0.0 }
 0x680   : > { %767 = vadd.xlane.f32.xlu1 %v766_v23 }
 0x70b   : > { %v765_v24 = vpop.xlane.xlu0 %764 }
 0x70c   : > { %v769_v2 = vmul.f32 0.03125, %v765_v24 }
 0x70d   : > { %v768_v25 = vpop.xlane.xlu1 %767 }
 0x70e   : > { %v771_v26 = vsub.f32 %v1408_v19, %v769_v2  ;;  %v770_v27 = vmul.f32 0.03125, %v768_v25 }
 0x710   : > { %v772_v3 = vsub.f32 %v1411_v21, %v770_v27  ;;  %v773_v28 = vmul.f32 %v771_v26, %v771_v26 }
 0x712   : > { %v775_v29 = vsel %vm259_vm1, %v773_v28, 0.0  ;;  %v774_v30 = vmul.f32 %v772_v3, %v772_v3 }
 0x713   : > { %776 = vadd.xlane.f32.xlu0 %v775_v29 }
 0x714   : > { %v778_v31 = vsel %vm259_vm1, %v774_v30, 0.0 }
 0x717   : > { %779 = vadd.xlane.f32.xlu0 %v778_v31 }
 0x7a0   : > { %v777_v34 = vpop.xlane.xlu0 %776 }
 0x7a1   : > { %v781_v35 = vmul.f32 0.03125, %v777_v34 }
 0x7a3   : > { %v783_v36 = vadd.f32 1e-05, %v781_v35 }
 0x7a4   : > { %v780_v38 = vpop.xlane.xlu0 %779 }
 0x7a5   : > { %1198 = vrsqrt.f32 %v783_v36  ;;  %v782_v39 = vmul.f32 0.03125, %v780_v38 }
 0x7a7   : > { %v784_v40 = vadd.f32 1e-05, %v782_v39 }
 0x7a9   : > { %1200 = vrsqrt.f32 %v784_v40 }
 0x7af   : > { %v1199_v37 = vpop.eup %1198 }
 0x7b0   : > { %v787_v41 = vmul.f32 %v1199_v37, %v771_v26 }
 0x7b2   : > { %v793_v44 = vmul.f32 %v1049_v42, %v787_v41 }
 0x7b3   : > { %v1201_v43 = vpop.eup %1200 }
 0x7b4   : > { %v788_v45 = vmul.f32 %v1201_v43, %v772_v3  ;;  %v799_v48 = vadd.f32 %v1050_v46, %v793_v44 }
 0x7b6   : > { %v794_v47 = vmul.f32 %v1049_v42, %v788_v45 }
 0x7b8   : > { %v800_v49 = vadd.f32 %v1050_v46, %v794_v47 }
 0x7ba   : > { %v805_v50 = vpack.c.bf16 %v800_v49, %v799_v48 }
 0x7bc   : > { %1134 = vmatmul.mubr.msk.bf16.vlgmr.msra.gmra.mrb[16].mxu1 %vm259_vm1, %v805_v50 }
 0x88f   : > { %v862_v54 = vpop.f32.mrb[16].mxu1 }
 0x890   : > { %v863_v55 = vadd.f32 %v1051_v53, %v862_v54  ;;  %v1135_v56 = vpop.f32.mrb[17].mxu1 }
 0x891   : > { %v865_v57 = vpop.f32.mrb[18].mxu1 }
 0x892   : > { %v871_v58 = vmul.f32 0.044715, %v863_v55  ;;  %v866_v59 = vadd.f32 %v1051_v53, %v865_v57  ;;  %v1136_v60 = vpop.f32.mrb[19].mxu1  ;;  %v869_v10 = vmul.f32 0.5, %v863_v55 }
 0x894   : > { %v873_v61 = vmul.f32 %v871_v58, %v863_v55  ;;  %v872_v62 = vmul.f32 0.044715, %v866_v59  ;;  %v870_v11 = vmul.f32 0.5, %v866_v59 }
 0x896   : > { %v875_v63 = vmul.f32 %v873_v61, %v863_v55  ;;  %v874_v0 = vmul.f32 %v872_v62, %v866_v59 }
 0x898   : > { %v877_v1 = vadd.f32 %v875_v63, %v863_v55  ;;  %v876_v17 = vmul.f32 %v874_v0, %v866_v59 }
 0x89a   : > { %v879_v4 = vmul.f32 0.7978846, %v877_v1  ;;  %v878_v5 = vadd.f32 %v876_v17, %v866_v59 }
 0x89c   : > { %1202 = vtanh.f32 %v879_v4  ;;  %v880_v6 = vmul.f32 0.7978846, %v878_v5 }
 0x89e   : > { %1204 = vtanh.f32 %v880_v6 }
 0x8a6   : > { %v1203_v7 = vpop.eup %1202 }
 0x8a7   : > { %v883_v8 = vadd.f32 1.0, %v1203_v7 }
 0x8a8   : > { %v1205_v9 = vpop.eup %1204 }
 0x8a9   : > { %v884_v12 = vadd.f32 1.0, %v1205_v9  ;;  %v885_v13 = vmul.f32 %v883_v8, %v869_v10 }
 0x8ab   : > { %v886_v14 = vmul.f32 %v884_v12, %v870_v11 }
 0x8ad   : > { %v891_v15 = vpack.c.bf16 %v886_v14, %v885_v13 }
 0x8af   : > { %1142 = vmatmul.mubr.bf16.vlgmr.msra.gmra.mrb[12].mxu0 %v891_v15 }
 0x982   : > { %v943_v18 = vpop.f32.mrb[12].mxu0 }
 0x983   : > { %v944_v20 = vadd.f32 %v1055_v16, %v943_v18  ;;  %v1143_v22 = vpop.f32.mrb[13].mxu0 }
 0x984   : > { %v946_v23 = vpop.f32.mrb[14].mxu0 }
 0x985   : > { %v950_v24 = vadd.f32 %v944_v20, %v1408_v19  ;;  %v947_v2 = vadd.f32 %v1055_v16, %v946_v23  ;;  %v1144_v25 = vpop.f32.mrb[15].mxu0 }
 0x987   : > { %952 = vst.msk [vmem:[#allocation2] sm:$0xff] %vm259_vm1, %v950_v24  ;;  %v951_v26 = vadd.f32 %v947_v2, %v1411_v21 }
 0x989   : > { %953 = vst.msk [vmem:[#allocation2 + $0x8] sm:$0xff] %vm259_vm1, %v951_v26 }
 0x98a   : > { %1219 = shalt.err (!%p1216_p12)
}
 0x98b   : > { %s1220_s30 = scalar_lea.hbm %s1471_s5, 256 }
 0x98c   : > { %p1221_p13 = scmp.ne.s32.totalorder %s1471_s5, %s1220_s30  ;;  %p1226_p2 = scmp.lt.u32.totalorder %s1220_s30, %s1471_s5 }
 0x98e   : > { %p1222_p0 = pnand %p1221_p13, %p1149_p5 }
 0x990   : > { %p1223_p1 = pneg %p1222_p0 }
 0x992   : > { %p1228_p3 = pnand %p1226_p2, %p1223_p1 }
 0x994   : > { %1231 = shalt.err (!%p1228_p3)
}
 0x995   : > { %s1253_s10 = smov 128   ;;  %s1254_s11 = smov 8  }
 0x996   : > { %1146 = dma.vmem_to_hbm [thread:$0]  (%p1149_p5), %s961_s25, 256, %s1471_s5, [#allocation3], %s1253_s10, %s1253_s10, %s1254_s11  }
 0x997   : > { %1237 = dma.done.wait (%p1149_p5), [#allocation3], 256  }
 0x998   : > { %1239 = vsyncadd (%p1149_p5), [#allocation3], 4294967040 }
 0x999 PF: > { %s16_s18 = sadd.s32 1, %s1242_s18  }
 0x99a   : > { %p13_p4 = scmp.ge.s32.totalorder %s16_s18, 4  }
 0x99c   :  { %15 = sbr.rel (!%p13_p4) target bundleno = 1 (0x1), region = 77 }
 0x9a3   :  { %976 = vsyncpa [#allocation3], 1 }
 0x9a4   :  { %978 = vsyncpa [#allocation3 + $0x1], 1 }

</bundles_post_ra>
